<compile_context>
chip_gen: v5e
topology: v5e:2x2
jax: 0.10.0
libtpu: 0.0.40
codegen_flags: <defaults>
</compile_context>

<pallas_src>
import functools
import math

import jax
import jax.numpy as jnp
from jax.experimental import pallas as pl
from jax.experimental.pallas import tpu as pltpu


def _smooth_l1_kernel(x_ref, t_ref, cw_ref, w_ref, e_ref, o_ref, *, beta: float):
    x = x_ref[...].astype(jnp.float32)            # (1, TR, LANES)
    t = t_ref[...].astype(jnp.float32)            # (1, TR, LANES)
    # NaN targets are replaced by the prediction -> zero diff, zero loss.
    t = jnp.where(jnp.isnan(t), x, t)
    diff = (x - t) * cw_ref[...]                  # (1, 1, LANES) sublane-broadcast
    n = jnp.abs(diff)
    if beta < 1e-5:                               # static branch (beta is a Python float)
        loss = n
    else:
        loss = jnp.where(n < beta, (0.5 / beta) * n * n, n - 0.5 * beta)
    # Expand compact per-anchor weights (TR, WLANES) -> (TR, LANES) on the idle
    # MXU: E[i, j] = 1 iff j // C == i, so the 0/1 matmul is exact.
    w = jnp.dot(w_ref[0].astype(jnp.float32), e_ref[...],
                preferred_element_type=jnp.float32)
    o_ref[...] = (loss * w[None]).astype(o_ref.dtype)


def _choose_row_tile(rows, lanes, batch, target_block_bytes, min_total_steps=8):
    """Rows per block: ~target_block_bytes per (f32) stream, sublane-aligned,
    capped so the total grid has >= min_total_steps steps (megacore balance)."""
    row_bytes = lanes * 4
    tr_cap = max(8, (target_block_bytes // row_bytes) // 8 * 8)
    blocks_per_batch = max(1, -(-min_total_steps // batch))
    tr_balance = max(8, (-(-rows // blocks_per_batch) + 7) // 8 * 8)
    tr = min(tr_cap, tr_balance)
    if tr >= rows:
        return rows                # single full-extent row block (always legal)
    return tr                      # multiple of 8; last block may be partial (masked)


def weighted_smooth_l1_loss(inp, target, weights=None, code_weights=None, *,
                            beta: float = 1.0 / 9.0,
                            target_block_bytes: int = 2 << 20):
    """
    Args:
        inp:          (B, A, C) predictions (f32 or bf16).
        target:       (B, A, C) regression targets (may contain NaN).
        weights:      (B, A)    per-anchor weights (or None -> ones).
        code_weights: (C,)      per-code weights (or None -> ones).
        beta:         Python float, L1<->L2 switch point.
    Returns:
        loss:         (B, A, C) un-reduced weighted smooth L1 loss (inp.dtype).
    """
    B, A, C = inp.shape
    assert target.shape == (B, A, C)
    if weights is None:
        weights = jnp.ones((B, A), dtype=jnp.float32)
    if code_weights is None:
        code_weights = jnp.ones((C,), dtype=jnp.float32)
    assert weights.shape == (B, A)
    assert code_weights.shape == (C,)

    N = A * C
    LANES = C * 128 // math.gcd(C, 128)       # lcm(C, 128): lane-dense & phase-aligned
    WLANES = LANES // C                       # anchors covered by one LANES-wide row
    rows = -(-N // LANES)                     # cdiv; NOT rounded up to the row tile
    N_pad = rows * LANES
    A_pad = rows * WLANES
    TR = _choose_row_tile(rows, LANES, B, target_block_bytes)
    grid_r = -(-rows // TR)
    out_dtype = inp.dtype

    def repack(flat, n, n_pad, lanes):        # (B, n) -> (B, rows, lanes), zero tail pad
        if n_pad != n:
            flat = jnp.pad(flat, ((0, 0), (0, n_pad - n)))
        return flat.reshape(B, rows, lanes)

    x3 = repack(inp.reshape(B, N), N, N_pad, LANES)            # native dtype
    t3 = repack(target.reshape(B, N), N, N_pad, LANES)         # native dtype
    w3 = repack(weights.reshape(B, A), A, A_pad, WLANES)       # compact: 1/C traffic
    cw_row = jnp.tile(code_weights.astype(jnp.float32), WLANES).reshape(1, 1, LANES)
    expand = jnp.repeat(jnp.eye(WLANES, dtype=jnp.float32), C, axis=1)  # (WLANES, LANES)

    # Explicit scoped-VMEM limit: double-buffered streams + resident constants.
    esz = lambda a: jnp.dtype(a.dtype).itemsize
    need = 2 * TR * LANES * (esz(x3) + esz(t3) + jnp.dtype(out_dtype).itemsize)
    need += 2 * TR * WLANES * esz(w3)
    need += 2 * (LANES * 4 + WLANES * LANES * 4)
    vmem_limit = int(min(48 * 1024 * 1024, max(32 * 1024 * 1024, 2 * need)))

    kernel = functools.partial(_smooth_l1_kernel, beta=float(beta))

    out3 = pl.pallas_call(
        kernel,
        out_shape=jax.ShapeDtypeStruct((B, rows, LANES), out_dtype),
        grid_spec=pltpu.PrefetchScalarGridSpec(
            num_scalar_prefetch=0,
            grid=(B, grid_r),
            in_specs=[
                pl.BlockSpec((1, TR, LANES), lambda b, r: (b, r, 0)),    # input
                pl.BlockSpec((1, TR, LANES), lambda b, r: (b, r, 0)),    # target
                pl.BlockSpec((1, 1, LANES), lambda b, r: (0, 0, 0)),     # code weights (resident)
                pl.BlockSpec((1, TR, WLANES), lambda b, r: (b, r, 0)),   # anchor weights (compact)
                pl.BlockSpec((WLANES, LANES), lambda b, r: (0, 0)),      # lane-expansion matrix (resident)
            ],
            out_specs=pl.BlockSpec((1, TR, LANES), lambda b, r: (b, r, 0)),
        ),
        compiler_params=pltpu.CompilerParams(
            dimension_semantics=("parallel", "parallel"),
            vmem_limit_bytes=vmem_limit),
    )(x3, t3, cw_row, w3, expand)

    out = out3.reshape(B, N_pad)
    if N_pad != N:
        out = out[:, :N]     # fused into the consumer when caller jits around this fn
    return out.reshape(B, A, C)


def _reference(inp, target, weights, code_weights, beta):
    # Pure-JAX reference mirroring the PyTorch forward.
    target = jnp.where(jnp.isnan(target), inp, target)
    diff = (inp - target) * code_weights.reshape(1, 1, -1)
    n = jnp.abs(diff)
    if beta < 1e-5:
        loss = n
    else:
        loss = jnp.where(n < beta, 0.5 * n ** 2 / beta, n - 0.5 * beta)
    return loss * weights[..., None]


if __name__ == "__main__":
    code_weights = jnp.array([1.0, 1.0, 1.0, 1.0, 1.0, 1.0, 0.5], dtype=jnp.float32)

    def run_case(B, A, C, beta):
        key = jax.random.PRNGKey(0)
        k1, k2, k3 = jax.random.split(key, 3)
        inp = jax.random.normal(k1, (B, A, C), dtype=jnp.float32)
        tgt = jax.random.normal(k2, (B, A, C), dtype=jnp.float32)
        # Inject NaNs into the target to exercise the isnan path.
        tgt = tgt.at[0, 0, 0].set(jnp.nan).at[B - 1, A - 3, C - 1].set(jnp.nan)
        w = jax.random.uniform(k3, (B, A), dtype=jnp.float32)
        out = weighted_smooth_l1_loss(inp, tgt, w, code_weights[:C], beta=beta)
        out = jax.block_until_ready(out)
        ref = _reference(inp, tgt, w, code_weights[:C], beta)
        assert out.shape == (B, A, C)
        assert jnp.allclose(out, ref, atol=1e-6, rtol=1e-5), (
            f"mismatch vs reference for shape {(B, A, C)}, beta={beta}")

    beta = 1.0 / 9.0
    # Canonical pcdet box code (C=7).  A=128 -> A*C == lcm(7,128): no padding.
    run_case(2, 128, 7, beta)
    # Ragged anchor count: exercises the tail-pad / output-slice path.
    run_case(2, 144, 7, beta)
    # Multi row-block grid with a masked partial boundary block (rows=18, TR=8).
    run_case(2, 2304, 7, beta)
    # beta < 1e-5 -> plain L1 path (static branch).
    run_case(2, 128, 7, 0.0)

    print("KERNEL_OK")
</pallas_src>

<mosaic_0001>
module attributes {stable_mosaic.version = 11 : i64} {
  func.func @_smooth_l1_kernel(%arg0: i32, %arg1: i32, %arg2: memref<1x1x896xf32, #tpu.memory_space<vmem>>, %arg3: memref<1x1x896xf32, #tpu.memory_space<vmem>>, %arg4: memref<1x1x896xf32, #tpu.memory_space<vmem>>, %arg5: memref<1x1x128xf32, #tpu.memory_space<vmem>>, %arg6: memref<128x896xf32, #tpu.memory_space<vmem>>, %arg7: memref<1x1x896xf32, #tpu.memory_space<vmem>>) attributes {dimension_semantics = [#tpu.dimension_semantics<parallel>, #tpu.dimension_semantics<parallel>], iteration_bounds = array<i64: 2, 1>, scalar_prefetch = 0 : i64, scratch_operands = 0 : i64, tpu.core_type = #tpu.core_type<tc>, window_params = [{transform_indices = @transform_0, window_bounds = array<i64: 1, 1, 896>}, {transform_indices = @transform_1, window_bounds = array<i64: 1, 1, 896>}, {pipeline_mode = #tpu.pipeline_mode<synchronous>, transform_indices = @transform_2, window_bounds = array<i64: 1, 1, 896>}, {transform_indices = @transform_3, window_bounds = array<i64: 1, 1, 128>}, {pipeline_mode = #tpu.pipeline_mode<synchronous>, transform_indices = @transform_4, window_bounds = array<i64: 128, 896>}, {transform_indices = @transform_5, window_bounds = array<i64: 1, 1, 896>}]} {
    %c0 = arith.constant 0 : index
    %c0_0 = arith.constant 0 : index
    %c0_1 = arith.constant 0 : index
    %0 = vector.load %arg2[%c0, %c0_0, %c0_1] : memref<1x1x896xf32, #tpu.memory_space<vmem>>, vector<1x1x896xf32>
    %c0_2 = arith.constant 0 : index
    %c0_3 = arith.constant 0 : index
    %c0_4 = arith.constant 0 : index
    %1 = vector.load %arg3[%c0_2, %c0_3, %c0_4] : memref<1x1x896xf32, #tpu.memory_space<vmem>>, vector<1x1x896xf32>
    %2 = arith.cmpf one, %1, %1 : vector<1x1x896xf32>
    %3 = arith.select %2, %0, %1 : vector<1x1x896xi1>, vector<1x1x896xf32>
    %4 = arith.subf %0, %3 : vector<1x1x896xf32>
    %c0_5 = arith.constant 0 : index
    %c0_6 = arith.constant 0 : index
    %c0_7 = arith.constant 0 : index
    %5 = vector.load %arg4[%c0_5, %c0_6, %c0_7] : memref<1x1x896xf32, #tpu.memory_space<vmem>>, vector<1x1x896xf32>
    %6 = arith.mulf %4, %5 : vector<1x1x896xf32>
    %7 = math.absf %6 : vector<1x1x896xf32>
    %cst = arith.constant 0.111111112 : f32
    %8 = vector.broadcast %cst : f32 to vector<1x1x896xf32>
    %9 = arith.cmpf olt, %7, %8 : vector<1x1x896xf32>
    %cst_8 = arith.constant 4.500000e+00 : f32
    %10 = vector.broadcast %cst_8 : f32 to vector<1x1x896xf32>
    %11 = arith.mulf %10, %7 : vector<1x1x896xf32>
    %12 = arith.mulf %11, %7 : vector<1x1x896xf32>
    %cst_9 = arith.constant 0.055555556 : f32
    %13 = vector.broadcast %cst_9 : f32 to vector<1x1x896xf32>
    %14 = arith.subf %7, %13 : vector<1x1x896xf32>
    %15 = arith.select %9, %12, %14 : vector<1x1x896xi1>, vector<1x1x896xf32>
    %c0_10 = arith.constant 0 : index
    %c0_11 = arith.constant 0 : index
    %c0_12 = arith.constant 0 : index
    %16 = vector.load %arg5[%c0_10, %c0_11, %c0_12] : memref<1x1x128xf32, #tpu.memory_space<vmem>>, vector<1x1x128xf32>
    %17 = vector.shape_cast %16 : vector<1x1x128xf32> to vector<1x128xf32>
    %c0_13 = arith.constant 0 : index
    %c0_14 = arith.constant 0 : index
    %18 = vector.load %arg6[%c0_13, %c0_14] : memref<128x896xf32, #tpu.memory_space<vmem>>, vector<128x896xf32>
    %cst_15 = arith.constant dense<0.000000e+00> : vector<1x896xf32>
    %19 = tpu.matmul %17, %18, %cst_15 {dimension_numbers = #tpu.dot_dimension_numbers<[1], [0], [0], [1], [0, 0, 1, 1], [], []>} : vector<1x128xf32>, vector<128x896xf32>, vector<1x896xf32> -> vector<1x896xf32>
    %20 = vector.shape_cast %19 : vector<1x896xf32> to vector<1x1x896xf32>
    %21 = arith.mulf %15, %20 : vector<1x1x896xf32>
    %c0_16 = arith.constant 0 : index
    %c0_17 = arith.constant 0 : index
    %c0_18 = arith.constant 0 : index
    %22 = vector.load %arg7[%c0_16, %c0_17, %c0_18] : memref<1x1x896xf32, #tpu.memory_space<vmem>>, vector<1x1x896xf32>
    tpu.vector_store %arg7[%c0_16, %c0_17, %c0_18], %21 {strides = array<i32>} : memref<1x1x896xf32, #tpu.memory_space<vmem>>, vector<1x1x896xf32>,
    return
  }
  func.func @transform_0(%arg0: i32, %arg1: i32) -> (i32, i32, i32) {
    %c0_i32 = arith.constant 0 : i32
    %c0_i32_0 = arith.constant 0 : i32
    return %arg0, %arg1, %c0_i32 : i32, i32, i32
  }
  func.func @transform_1(%arg0: i32, %arg1: i32) -> (i32, i32, i32) {
    %c0_i32 = arith.constant 0 : i32
    %c0_i32_0 = arith.constant 0 : i32
    return %arg0, %arg1, %c0_i32 : i32, i32, i32
  }
  func.func @transform_2(%arg0: i32, %arg1: i32) -> (i32, i32, i32) {
    %c0_i32 = arith.constant 0 : i32
    %c0_i32_0 = arith.constant 0 : i32
    %c0_i32_1 = arith.constant 0 : i32
    %c0_i32_2 = arith.constant 0 : i32
    return %c0_i32, %c0_i32_0, %c0_i32_1 : i32, i32, i32
  }
  func.func @transform_3(%arg0: i32, %arg1: i32) -> (i32, i32, i32) {
    %c0_i32 = arith.constant 0 : i32
    %c0_i32_0 = arith.constant 0 : i32
    return %arg0, %arg1, %c0_i32 : i32, i32, i32
  }
  func.func @transform_4(%arg0: i32, %arg1: i32) -> (i32, i32) {
    %c0_i32 = arith.constant 0 : i32
    %c0_i32_0 = arith.constant 0 : i32
    %c0_i32_1 = arith.constant 0 : i32
    return %c0_i32, %c0_i32_0 : i32, i32
  }
  func.func @transform_5(%arg0: i32, %arg1: i32) -> (i32, i32, i32) {
    %c0_i32 = arith.constant 0 : i32
    %c0_i32_0 = arith.constant 0 : i32
    return %arg0, %arg1, %c0_i32 : i32, i32, i32
  }
}

</mosaic_0001>

<bundles_post_ra>
// kernel: tpu_custom_call.1
= control target key start
LH: loop header
LB: loop body
LE: loop exit
PB: predicated region body
PF: predicated region fallthrough
CT: control target
= control target key end

     0   :  { %s1362_s0 = inlined_call_operand.hbm [shape: f32[2,1,896], index: 0, kind: input, shape index: {}]   ;;  %s1363_s1 = inlined_call_operand.hbm [shape: f32[2,1,896], index: 1, kind: input, shape index: {}]   ;;  %s1364_s2 = inlined_call_operand.hbm [shape: f32[1,1,896], index: 2, kind: input, shape index: {}]   ;;  %s1365_s3 = inlined_call_operand.vmem [shape: f32[2,1,128], index: 3, kind: input, shape index: {}]   ;;  %s1366_s4 = inlined_call_operand.hbm [shape: f32[128,896], index: 4, kind: input, shape index: {}]   ;;  %s1367_s5 = inlined_call_operand.hbm [shape: f32[2,1,896], index: 5, kind: output, shape index: {}]  }
   0x1   :  { %1371 = sst [smem:[#allocation20_spill]] %s1364_s2 }
   0x2   :  { %1372 = sst [smem:[#allocation21_spill]] %s1366_s4 }
   0x3   :  { %10 = vsyncpa [#allocation3], 0 }
   0x4   :  { %12 = vsyncpa [#allocation3 + $0x1], 0 }
   0x5   :  { %13 = vsyncpa [#allocation6], 0 }
   0x6   :  { %15 = vsyncpa [#allocation6 + $0x1], 0 }
   0x7   :  { %16 = vsyncpa [#allocation9], 0 }
   0x8   :  { %17 = vsyncpa [#allocation4], 0 }
   0x9   :  { %19 = vsyncpa [#allocation4 + $0x1], 0  ;;  %s1171_s18 = smov 0   ;;  %s1173_s19 = smov 0  }
   0xa   :  { %s1175_s20 = smov 0   ;;  %s1177_s21 = smov 0  }
   0xb   :  { %s1179_s22 = smov 0   ;;  %s1181_s23 = smov 0  }
   0xc LB: > { %1373 = sst [smem:[#allocation16_spill]] %s1123_s20  ;;  %s1202_s24 = sadd.s32 4294967295, %s1135_s23   ;;  %s1135_s23 = sphi %s1181_s23, %s25_s23   ;;  %s1131_s22 = sphi %s1179_s22, %s1390_s22   ;;  %s1127_s21 = sphi %s1177_s21, %s1386_s21   ;;  %s1123_s20 = sphi %s1175_s20, %s1385_s20   ;;  %s1119_s19 = sphi %s1173_s19, %s1389_s19   ;;  %s1115_s18 = sphi %s1171_s18, %s1388_s18  }
   0xd   : > { %1374 = sst [smem:[#allocation17_spill]] %s1131_s22  ;;  %s814_s25 = sadd.s32 4294967294, %s1135_s23  }
   0xe   : > { %p59_p0 = scmp.ne.s32.totalorder %s1119_s19, %s1115_s18  ;;  %p60_p1 = scmp.eq.s32.totalorder %s1202_s24, 0 }
   0xf   : > { %p183_p2 = scmp.eq.s32.totalorder %s1202_s24, 1  ;;  %p189_p3 = scmp.eq.s32.totalorder %s814_s25, 1 }
  0x10   : > { %p1211_p4 = por %p60_p1, %p59_p0  ;;  %p815_p5 = scmp.ge.s32.totalorder %s1135_s23, 1 }
  0x11   : > { %p1216_p6 = por %p189_p3, %p59_p0  ;;  %p196_p7 = scmp.lt.s32.totalorder %s1135_s23, 3 }
  0x12   : > { %s1377_s2 = sld [smem:[#allocation20_spill]]  ;;  %p818_p9 = scmp.ge.s32.totalorder %s1135_s23, 2 }
  0x13   : > { %p1224_p8 = pnand %p815_p5, %p196_p7  ;;  %s1137_s7 = smov [#allocation7]  }
  0x14   : > { %s210_s8 = sshll.u32 %s1137_s7, 4  ;;  %s1379_s4 = sld [smem:[#allocation21_spill]]  ;;  %s211_s8 = int_to_ptr.vmem [resolvable:$true] %s210_s8 }
  0x15   : > { %p845_p10 = pneg %p1224_p8  ;;  %s1138_s12 = smov [#allocation8]  }
  0x16   : > { %s221_s13 = sshll.u32 %s1138_s12, 4  ;;  %s1139_s14 = smov 896   ;;  %s222_s13 = int_to_ptr.vmem [resolvable:$true] %s221_s13 }
  0x17   : > { %p846_p11 = pnand %p845_p10, %p60_p1  ;;  %s1140_s15 = smov 56  }
  0x18   : > { %s208_s30 = sshll.u32 %s1377_s2, 4  ;;  %s37_s16 = sadd.s32 1, %s1131_s22  ;;  %s209_s30 = int_to_ptr.hbm [resolvable:$true] %s208_s30 }
  0x19   : > { %848 = dma.hbm_to_vmem [thread:$0]  (!%p846_p11), %s209_s30, 112, %s211_s8, [#allocation6]  }
  0x1a   : > { %s219_s11 = sshll.u32 %s1379_s4, 4  ;;  %s46_s17 = sadd.s32 1, %s1123_s20  ;;  %s220_s11 = int_to_ptr.hbm [resolvable:$true] %s219_s11 }
  0x1b   : > { %851 = dma.hbm_to_vmem [thread:$0]  (!%p846_p11), %s220_s11, 14336, %s222_s13, [#allocation9], %s1139_s14, %s1139_s14, %s1140_s15  }
  0x1c   : > { %p39_p12 = scmp.ge.s32.totalorder %s37_s16, 2  ;;  %p53_p13 = scmp.ne.s32.totalorder %s1123_s20, %s1119_s19 }
  0x1d   : > { %p54_p0 = scmp.eq.s32.totalorder %s1135_s23, 0  ;;  %p865_p3 = scmp.lt.s32.totalorder %s1135_s23, 2 }
  0x1e   : > { %s1392_s16 = smov (%p39_p12, %s37_s16), 0  ;;  %p1246_p7 = por %p183_p2, %p53_p13 }
  0x1f   : > { %1380 = sst [smem:[#allocation18_spill]] %s1392_s16  ;;  %p55_p5 = por %p54_p0, %p53_p13 }
  0x20   : > { %s41_s28 = ssub.s32 %s1131_s22, %s1392_s16  ;;  %s235_s29 = sand.u32 1, %s1123_s20  }
  0x21   : > { %p44_p10 = scmp.eq.s32.totalorder %s41_s28, 0  ;;  %s825_s30 = smul.u32 7, %s235_s29 }
  0x22   : > { %p1253_p11 = pnand %p865_p3, %p55_p5  ;;  %s826_s9 = smul.u32 7, %s1131_s22 }
  0x23   : > { %s1258_s8 = scalar_select %p44_p10, %s1123_s20, %s46_s17  }
  0x24   : > { %s239_s10 = scalar_lea.vmem [#allocation2], %s825_s30  ;;  %s245_s14 = scalar_lea.hbm %s1362_s0, %s826_s9 }
  0x25   : > { %1383 = sst [smem:[#allocation19_spill]] %s1258_s8  ;;  %s249_s11 = sshll.u32 %s239_s10, 4  ;;  %s250_s11 = int_to_ptr.vmem [resolvable:$true] %s249_s11 }
  0x26   : > { %s247_s15 = sshll.u32 %s245_s14, 4  ;;  %s256_s2 = sand.u32 1, %s1135_s23   ;;  %s248_s15 = int_to_ptr.hbm [resolvable:$true] %s247_s15 }
  0x27   : > { %s236_s28 = scalar_lea.sflag [#allocation3], %s235_s29  ;;  %s266_s17 = scalar_lea.hbm %s1363_s1, %s826_s9 }
  0x28   : > { %855 = dma.hbm_to_vmem [thread:$0]  (!%p1253_p11), %s248_s15, 112, %s250_s11, %s236_s28  }
  0x29   : > { %s268_s8 = sshll.u32 %s266_s17, 4  ;;  %s260_s22 = scalar_lea.vmem [#allocation5], %s825_s30  ;;  %s269_s8 = int_to_ptr.hbm [resolvable:$true] %s268_s8 }
  0x2a   : > { %s270_s20 = sshll.u32 %s260_s22, 4  ;;  %s257_s10 = scalar_lea.sflag [#allocation6], %s256_s2  ;;  %s271_s20 = int_to_ptr.vmem [resolvable:$true] %s270_s20 }
  0x2b   : > { %858 = dma.hbm_to_vmem [thread:$0]  (!%p1253_p11), %s269_s8, 112, %s271_s20, %s257_s10  }
  0x2c   : > { %288 = sbr.rel (%p1224_p8) target bundleno = 262 (0x106), region = 40  ;;  %s1275_s29 = sand.u32 (!%p1224_p8), 1, %s1119_s19  }
  0x2d   : > { %s1278_s11 = smul.u32 (!%p1224_p8), 7, %s1275_s29  ;;  %s291_s4 = scalar_lea.sflag (!%p1224_p8), [#allocation3], %s1275_s29 }
  0x2f   : > { %s294_s16 = scalar_lea.vmem (!%p1224_p8), [#allocation2], %s1278_s11 }
  0x31   : > { %1094 = dma.done.wait (%p1211_p4), %s291_s4, 112  }
  0x32   : > { %1096 = vsyncadd (%p1211_p4), %s291_s4, 4294967184  ;;  %s300_s2 = sand.u32 1, %s1202_s24   ;;  %s304_s22 = scalar_lea.vmem [#allocation5], %s1278_s11 }
  0x33   : > { %s301_s20 = scalar_lea.sflag [#allocation6], %s300_s2 }
  0x34   : > { %1098 = dma.done.wait (%p1211_p4), %s301_s20, 112  }
  0x35   : > { %1100 = vsyncadd (%p1211_p4), %s301_s20, 4294967184 }
  0x36   : > { %1102 = dma.done.wait (%p60_p1), [#allocation6], 112  }
  0x37   : > { %1104 = vsyncadd (%p60_p1), [#allocation6], 4294967184 }
  0x38   : > { %1106 = dma.done.wait (%p60_p1), [#allocation9], 14336  }
  0x39   : > { %1108 = vsyncadd (%p60_p1), [#allocation9], 4294952960  ;;  %v480_v0 = vld [vmem:[#allocation8 + $0x358] sm:$0xff]  ;;  %v473_v1 = vld [vmem:[#allocation8 + $0x320] sm:$0xff]  ;;  %p353_p1 = scmp.lt.s32.totalorder %s1127_s21, 1  ;;  %s830_s7 = smul.u32 7, %s1127_s21 }
  0x3a   : > { %525 = vmatpush.msra.mxu2 %v480_v0  ;;  %v478_v2 = vld [vmem:[#allocation8 + $0x348] sm:$0xff]  ;;  %v479_v3 = vld [vmem:[#allocation8 + $0x350] sm:$0xff]  ;;  %v472_v6 = vld [vmem:[#allocation8 + $0x318] sm:$0xff]  ;;  %vm640_vm1 = vcmask 1042434   ;;  %vm638_vm2 = vcmask 1040384   ;;  %vm644_vm3 = vcmask 1044484  }
  0x3b   : > { %v466_v4 = vld [vmem:[#allocation8 + $0x2e8] sm:$0xff]  ;;  %485 = vmatpush.msra.mxu0 %v478_v2  ;;  %505 = vmatpush.msra.mxu1 %v479_v3  ;;  %v471_v5 = vld [vmem:[#allocation8 + $0x310] sm:$0xff]  ;;  %v464_v7 = vld [vmem:[#allocation8 + $0x2d8] sm:$0xff]  ;;  %s1304_s24 = scalar_select %p353_p1, %s1127_s21, 1  ;;  %vm642_vm4 = vcmask 1041408   ;;  %vm646_vm6 = vcmask 1045508  }
  0x3c   : > { %526 = vmatpush.msra.mxu2 %v473_v1  ;;  %v465_v8 = vld [vmem:[#allocation8 + $0x2e0] sm:$0xff]  ;;  %v459_v9 = vld [vmem:[#allocation8 + $0x2b0] sm:$0xff]  ;;  %v458_v11 = vld [vmem:[#allocation8 + $0x2a8] sm:$0xff]  ;;  %s670_s21 = scalar_lea.hbm %s1367_s5, %s830_s7  ;;  %vm648_vm7 = vcmask 1043456   ;;  %s352_s12 = scalar_lea.vmem [#allocation10], %s1278_s11 }
  0x3d   : > { %486 = vmatpush.msra.mxu0 %v471_v5  ;;  %506 = vmatpush.msra.mxu1 %v472_v6  ;;  %v457_v10 = vld [vmem:[#allocation8 + $0x2a0] sm:$0xff]  ;;  %v452_v12 = vld [vmem:[#allocation8 + $0x278] sm:$0xff]  ;;  %v450_v13 = vld [vmem:[#allocation8 + $0x268] sm:$0xff]  ;;  %s358_s30 = scalar_lea.vmem %s1365_s3, %s1304_s24  ;;  %s672_s13 = sshll.u32 %s352_s12, 4  ;;  %s673_s13 = int_to_ptr.vmem [resolvable:$true] %s672_s13 }
  0x3e   : > { %527 = vmatpush.msra.mxu2 %v466_v4  ;;  %v451_v14 = vld [vmem:[#allocation8 + $0x270] sm:$0xff]  ;;  %v445_v15 = vld [vmem:[#allocation8 + $0x240] sm:$0xff]  ;;  %v444_v17 = vld [vmem:[#allocation8 + $0x238] sm:$0xff]  ;;  %s674_s14 = sshll.u32 %s670_s21, 4  ;;  %s658_s15 = scalar_lea.sflag [#allocation4], %s1275_s29  ;;  %s675_s14 = int_to_ptr.hbm [resolvable:$true] %s674_s14 }
  0x3f   : > { %487 = vmatpush.msra.mxu0 %v464_v7  ;;  %507 = vmatpush.msra.mxu1 %v465_v8  ;;  %v443_v16 = vld [vmem:[#allocation8 + $0x230] sm:$0xff]  ;;  %v481_v18 = vld [vmem:[#allocation8 + $0x360] sm:$0xff]  ;;  %v438_v19 = vld [vmem:[#allocation8 + $0x208] sm:$0xff]  ;;  %s1055_s28 = sshra.s32 %s675_s14, 4  ;;  %s1061_s4 = scalar_lea.hbm %s1367_s5, 14  ;;  %s1056_s28 = int_to_ptr.hbm [resolvable:$true] %s1055_s28 }
  0x40   : > { %528 = vmatpush.msra.mxu2 %v459_v9  ;;  %v474_v20 = vld [vmem:[#allocation8 + $0x328] sm:$0xff]  ;;  %v436_v21 = vld [vmem:[#allocation8 + $0x1f8] sm:$0xff]  ;;  %v437_v22 = vld [vmem:[#allocation8 + $0x200] sm:$0xff]  ;;  %545 = vmatpush.msra.mxu3 %v481_v18  ;;  %s1057_s17 = scalar_lea.hbm %s1056_s28, 7  ;;  %p1062_p12 = scmp.lt.s32.totalorder %s1056_s28, %s1367_s5 }
  0x41   : > { %488 = vmatpush.msra.mxu0 %v457_v10  ;;  %508 = vmatpush.msra.mxu1 %v458_v11  ;;  %v431_v23 = vld [vmem:[#allocation8 + $0x1d0] sm:$0xff]  ;;  %v429_v25 = vld [vmem:[#allocation8 + $0x1c0] sm:$0xff]  ;;  %v430_v26 = vld [vmem:[#allocation8 + $0x1c8] sm:$0xff]  ;;  %p1058_p2 = scmp.ne.s32.totalorder %s1056_s28, %s1057_s17  ;;  %p1063_p13 = scmp.lt.s32.totalorder %s1061_s4, %s1057_s17 }
  0x42   : > { %529 = vmatpush.msra.mxu2 %v452_v12  ;;  %v467_v24 = vld [vmem:[#allocation8 + $0x2f0] sm:$0xff]  ;;  %546 = vmatpush.msra.mxu3 %v474_v20  ;;  %v424_v27 = vld [vmem:[#allocation8 + $0x198] sm:$0xff]  ;;  %v422_v29 = vld [vmem:[#allocation8 + $0x188] sm:$0xff] }
  0x43   : > { %489 = vmatpush.msra.mxu0 %v450_v13  ;;  %509 = vmatpush.msra.mxu1 %v451_v14  ;;  %v460_v28 = vld [vmem:[#allocation8 + $0x2b8] sm:$0xff]  ;;  %v423_v30 = vld [vmem:[#allocation8 + $0x190] sm:$0xff]  ;;  %v417_v31 = vld [vmem:[#allocation8 + $0x160] sm:$0xff]  ;;  %p1059_p4 = pnand %p1058_p2, %p1246_p7  ;;  %p1064_p0 = por %p1063_p13, %p1062_p12 }
  0x44   : > { %530 = vmatpush.msra.mxu2 %v445_v15  ;;  %547 = vmatpush.msra.mxu3 %v467_v24  ;;  %v453_v32 = vld [vmem:[#allocation8 + $0x280] sm:$0xff]  ;;  %v415_v33 = vld [vmem:[#allocation8 + $0x150] sm:$0xff]  ;;  %v416_v34 = vld [vmem:[#allocation8 + $0x158] sm:$0xff] }
  0x45   : > { %490 = vmatpush.msra.mxu0 %v443_v16  ;;  %510 = vmatpush.msra.mxu1 %v444_v17  ;;  %v410_v35 = vld [vmem:[#allocation8 + $0x128] sm:$0xff]  ;;  %v408_v37 = vld [vmem:[#allocation8 + $0x118] sm:$0xff]  ;;  %v409_v38 = vld [vmem:[#allocation8 + $0x120] sm:$0xff]  ;;  %p1060_p8 = pneg %p1059_p4 }
  0x46   : > { %531 = vmatpush.msra.mxu2 %v438_v19  ;;  %548 = vmatpush.msra.mxu3 %v460_v28  ;;  %v446_v36 = vld [vmem:[#allocation8 + $0x248] sm:$0xff]  ;;  %v403_v39 = vld [vmem:[#allocation8 + $0xf0] sm:$0xff]  ;;  %v401_v41 = vld [vmem:[#allocation8 + $0xe0] sm:$0xff] }
  0x47   : > { %491 = vmatpush.msra.mxu0 %v436_v21  ;;  %511 = vmatpush.msra.mxu1 %v437_v22  ;;  %v439_v40 = vld [vmem:[#allocation8 + $0x210] sm:$0xff]  ;;  %v402_v42 = vld [vmem:[#allocation8 + $0xe8] sm:$0xff]  ;;  %v396_v43 = vld [vmem:[#allocation8 + $0xb8] sm:$0xff]  ;;  %p1065_p3 = pnand %p1064_p0, %p1060_p8 }
  0x48   : > { %532 = vmatpush.msra.mxu2 %v431_v23  ;;  %549 = vmatpush.msra.mxu3 %v453_v32  ;;  %v432_v44 = vld [vmem:[#allocation8 + $0x1d8] sm:$0xff]  ;;  %v394_v45 = vld [vmem:[#allocation8 + $0xa8] sm:$0xff]  ;;  %v395_v46 = vld [vmem:[#allocation8 + $0xb0] sm:$0xff] }
  0x49   : > { %492 = vmatpush.msra.mxu0 %v429_v25  ;;  %512 = vmatpush.msra.mxu1 %v430_v26  ;;  %v389_v47 = vld [vmem:[#allocation8 + $0x80] sm:$0xff]  ;;  %v387_v49 = vld [vmem:[#allocation8 + $0x70] sm:$0xff]  ;;  %v388_v50 = vld [vmem:[#allocation8 + $0x78] sm:$0xff] }
  0x4a   : > { %533 = vmatpush.msra.mxu2 %v424_v27  ;;  %550 = vmatpush.msra.mxu3 %v446_v36  ;;  %v425_v48 = vld [vmem:[#allocation8 + $0x1a0] sm:$0xff]  ;;  %v382_v51 = vld [vmem:[#allocation8 + $0x48] sm:$0xff]  ;;  %v380_v53 = vld [vmem:[#allocation8 + $0x38] sm:$0xff] }
  0x4b   : > { %493 = vmatpush.msra.mxu0 %v422_v29  ;;  %513 = vmatpush.msra.mxu1 %v423_v30  ;;  %v418_v52 = vld [vmem:[#allocation8 + $0x168] sm:$0xff]  ;;  %v381_v54 = vld [vmem:[#allocation8 + $0x40] sm:$0xff]  ;;  %v375_v55 = vld [vmem:[#allocation8 + $0x10] sm:$0xff] }
  0x4c   : > { %534 = vmatpush.msra.mxu2 %v417_v31  ;;  %551 = vmatpush.msra.mxu3 %v439_v40  ;;  %v411_v56 = vld [vmem:[#allocation8 + $0x130] sm:$0xff]  ;;  %v484_v57 = vld [vmem:[#allocation8 + $0x378] sm:$0xff]  ;;  %v373_v58 = vld [vmem:[#allocation8] sm:$0xff] }
  0x4d   : > { %494 = vmatpush.msra.mxu0 %v415_v33  ;;  %514 = vmatpush.msra.mxu1 %v416_v34  ;;  %v374_v59 = vld [vmem:[#allocation8 + $0x8] sm:$0xff]  ;;  %v477_v61 = vld [vmem:[#allocation8 + $0x340] sm:$0xff]  ;;  %v483_v62 = vld [vmem:[#allocation8 + $0x370] sm:$0xff] }
  0x4e   : > { %535 = vmatpush.msra.mxu2 %v410_v35  ;;  %552 = vmatpush.msra.mxu3 %v432_v44  ;;  %v482_v60 = vld [vmem:[#allocation8 + $0x368] sm:$0xff]  ;;  %v475_v63 = vld [vmem:[#allocation8 + $0x330] sm:$0xff]  ;;  %v404_v0 = vld [vmem:[#allocation8 + $0xf8] sm:$0xff] }
  0x4f   : > { %495 = vmatpush.msra.mxu0 %v408_v37  ;;  %515 = vmatpush.msra.mxu1 %v409_v38  ;;  %v470_v1 = vld [vmem:[#allocation8 + $0x308] sm:$0xff]  ;;  %v476_v2 = vld [vmem:[#allocation8 + $0x338] sm:$0xff]  ;;  %v397_v4 = vld [vmem:[#allocation8 + $0xc0] sm:$0xff] }
  0x50   : > { %536 = vmatpush.msra.mxu2 %v403_v39  ;;  %553 = vmatpush.msra.mxu3 %v425_v48  ;;  %v468_v3 = vld [vmem:[#allocation8 + $0x2f8] sm:$0xff]  ;;  %v463_v5 = vld [vmem:[#allocation8 + $0x2d0] sm:$0xff]  ;;  %v469_v6 = vld [vmem:[#allocation8 + $0x300] sm:$0xff] }
  0x51   : > { %496 = vmatpush.msra.mxu0 %v401_v41  ;;  %516 = vmatpush.msra.mxu1 %v402_v42  ;;  %v461_v7 = vld [vmem:[#allocation8 + $0x2c0] sm:$0xff]  ;;  %v390_v8 = vld [vmem:[#allocation8 + $0x88] sm:$0xff]  ;;  %v456_v9 = vld [vmem:[#allocation8 + $0x298] sm:$0xff] }
  0x52   : > { %537 = vmatpush.msra.mxu2 %v396_v43  ;;  %554 = vmatpush.msra.mxu3 %v418_v52  ;;  %v462_v10 = vld [vmem:[#allocation8 + $0x2c8] sm:$0xff]  ;;  %v383_v12 = vld [vmem:[#allocation8 + $0x50] sm:$0xff]  ;;  %v449_v13 = vld [vmem:[#allocation8 + $0x260] sm:$0xff] }
  0x53   : > { %497 = vmatpush.msra.mxu0 %v394_v45  ;;  %517 = vmatpush.msra.mxu1 %v395_v46  ;;  %v454_v11 = vld [vmem:[#allocation8 + $0x288] sm:$0xff]  ;;  %v455_v14 = vld [vmem:[#allocation8 + $0x290] sm:$0xff]  ;;  %v376_v16 = vld [vmem:[#allocation8 + $0x18] sm:$0xff] }
  0x54   : > { %538 = vmatpush.msra.mxu2 %v389_v47  ;;  %555 = vmatpush.msra.mxu3 %v411_v56  ;;  %v447_v15 = vld [vmem:[#allocation8 + $0x250] sm:$0xff]  ;;  %v442_v17 = vld [vmem:[#allocation8 + $0x228] sm:$0xff]  ;;  %v448_v18 = vld [vmem:[#allocation8 + $0x258] sm:$0xff] }
  0x55   : > { %498 = vmatpush.msra.mxu0 %v387_v49  ;;  %518 = vmatpush.msra.mxu1 %v388_v50  ;;  %v440_v19 = vld [vmem:[#allocation8 + $0x218] sm:$0xff]  ;;  %v435_v21 = vld [vmem:[#allocation8 + $0x1f0] sm:$0xff]  ;;  %v441_v22 = vld [vmem:[#allocation8 + $0x220] sm:$0xff] }
  0x56   : > { %539 = vmatpush.msra.mxu2 %v382_v51  ;;  %556 = vmatpush.msra.mxu3 %v404_v0  ;;  %v1310_v20 = vld [vmem:[%s358_s30] sm:$0x1]  ;;  %v433_v23 = vld [vmem:[#allocation8 + $0x1e0] sm:$0xff]  ;;  %v434_v25 = vld [vmem:[#allocation8 + $0x1e8] sm:$0xff] }
  0x57   : > { %499 = vmatpush.msra.mxu0 %v380_v53  ;;  %519 = vmatpush.msra.mxu1 %v381_v54  ;;  %v428_v24 = vld [vmem:[#allocation8 + $0x1b8] sm:$0xff]  ;;  %v426_v26 = vld [vmem:[#allocation8 + $0x1a8] sm:$0xff]  ;;  %v421_v27 = vld [vmem:[#allocation8 + $0x180] sm:$0xff] }
  0x58   : > { %540 = vmatpush.msra.mxu2 %v375_v55  ;;  %557 = vmatpush.msra.mxu3 %v397_v4  ;;  %v427_v28 = vld [vmem:[#allocation8 + $0x1b0] sm:$0xff]  ;;  %v414_v30 = vld [vmem:[#allocation8 + $0x148] sm:$0xff]  ;;  %v420_v31 = vld [vmem:[#allocation8 + $0x178] sm:$0xff] }
  0x59   : > { %500 = vmatpush.msra.mxu0 %v373_v58  ;;  %520 = vmatpush.msra.mxu1 %v374_v59  ;;  %v419_v29 = vld [vmem:[#allocation8 + $0x170] sm:$0xff]  ;;  %v412_v32 = vld [vmem:[#allocation8 + $0x138] sm:$0xff]  ;;  %v413_v34 = vld [vmem:[#allocation8 + $0x140] sm:$0xff] }
  0x5a   : > { %605 = vmatpush.msrb.mxu2 %v484_v57  ;;  %558 = vmatpush.msra.mxu3 %v390_v8  ;;  %v407_v33 = vld [vmem:[#allocation8 + $0x110] sm:$0xff]  ;;  %v405_v35 = vld [vmem:[#allocation8 + $0x100] sm:$0xff]  ;;  %v400_v36 = vld [vmem:[#allocation8 + $0xd8] sm:$0xff] }
  0x5b   : > { %565 = vmatpush.msrb.mxu0 %v482_v60  ;;  %585 = vmatpush.msrb.mxu1 %v483_v62  ;;  %v406_v37 = vld [vmem:[#allocation8 + $0x108] sm:$0xff]  ;;  %v393_v38 = vld [vmem:[#allocation8 + $0xa0] sm:$0xff]  ;;  %v399_v40 = vld [vmem:[#allocation8 + $0xd0] sm:$0xff] }
  0x5c   : > { %606 = vmatpush.msrb.mxu2 %v477_v61  ;;  %559 = vmatpush.msra.mxu3 %v383_v12  ;;  %v398_v39 = vld [vmem:[#allocation8 + $0xc8] sm:$0xff]  ;;  %v391_v42 = vld [vmem:[#allocation8 + $0x90] sm:$0xff]  ;;  %v392_v43 = vld [vmem:[#allocation8 + $0x98] sm:$0xff] }
  0x5d   : > { %566 = vmatpush.msrb.mxu0 %v475_v63  ;;  %586 = vmatpush.msrb.mxu1 %v476_v2  ;;  %v386_v41 = vld [vmem:[#allocation8 + $0x68] sm:$0xff]  ;;  %v379_v44 = vld [vmem:[#allocation8 + $0x30] sm:$0xff]  ;;  %v384_v45 = vld [vmem:[#allocation8 + $0x58] sm:$0xff] }
  0x5e   : > { %607 = vmatpush.msrb.mxu2 %v470_v1  ;;  %560 = vmatpush.msra.mxu3 %v376_v16  ;;  %v385_v46 = vld [vmem:[#allocation8 + $0x60] sm:$0xff]  ;;  %v378_v48 = vld [vmem:[#allocation8 + $0x28] sm:$0xff]  ;;  %v364_v53 = vld [vmem:[#allocation7] sm:$0xff] }
  0x5f   : > { %567 = vmatpush.msrb.mxu0 %v468_v3  ;;  %587 = vmatpush.msrb.mxu1 %v469_v6  ;;  %v377_v47 = vld [vmem:[#allocation8 + $0x20] sm:$0xff]  ;;  %v360_v49 = vld [vmem:[%s304_s22] sm:$0xff] }
  0x60   : > { %608 = vmatpush.msrb.mxu2 %v463_v5  ;;  %561 = vmatmul.f32.vlgmr.msra.gmra.mxu3 %v1310_v20  ;;  %v359_v50 = vld [vmem:[%s294_s16] sm:$0xff]  ;;  %vm361_vm0 = vcmp.ne.f32.partialorder %v360_v49, %v360_v49 }
  0x61   : > { %568 = vmatpush.msrb.mxu0 %v461_v7  ;;  %588 = vmatpush.msrb.mxu1 %v462_v10  ;;  %v362_v51 = vsel %vm361_vm0, %v359_v50, %v360_v49  ;;  %v652_v10 = vlaneseq }
  0x62   : > { %609 = vmatpush.msrb.mxu2 %v456_v9  ;;  %521 = vmatmul.f32.vlgmr.msra.gmra.mxu1 %v1310_v20  ;;  %v363_v52 = vsub.f32 %v359_v50, %v362_v51 }
  0x63   : > { %569 = vmatpush.msrb.mxu0 %v454_v11  ;;  %589 = vmatpush.msrb.mxu1 %v455_v14  ;;  %vm654_vm8 = vcmp.lt.s32.totalorder %v652_v10, 896 }
  0x64   : > { %610 = vmatpush.msrb.mxu2 %v449_v13  ;;  %501 = vmatmul.f32.vlgmr.msra.gmra.mxu0 %v1310_v20  ;;  %v365_v54 = vmul.f32 %v364_v53, %v363_v52 }
  0x65   : > { %570 = vmatpush.msrb.mxu0 %v447_v15  ;;  %590 = vmatpush.msrb.mxu1 %v448_v18 }
  0x66   : > { %611 = vmatpush.msrb.mxu2 %v442_v17  ;;  %v366_v57 = vand.u32 2147483647, %v365_v54 }
  0x67   : > { %571 = vmatpush.msrb.mxu0 %v440_v19  ;;  %541 = vmatmul.f32.vlgmr.msra.gmra.mxu2 %v1310_v20 }
  0x68   : > { %612 = vmatpush.msrb.mxu2 %v435_v21  ;;  %591 = vmatpush.msrb.mxu1 %v441_v22  ;;  %v368_v60 = vmul.f32 4.5, %v366_v57  ;;  %v822_v5 = vadd.f32 -0.055555556, %v366_v57  ;;  %vm367_vm5 = vcmp.lt.f32.partialorder %v366_v57, 0.11111111 }
  0x69   : > { %572 = vmatpush.msrb.mxu0 %v433_v23 }
  0x6a   : > { %613 = vmatpush.msrb.mxu2 %v428_v24  ;;  %592 = vmatpush.msrb.mxu1 %v434_v25  ;;  %v369_v4 = vmul.f32 %v368_v60, %v366_v57 }
  0x6b   : > { %573 = vmatpush.msrb.mxu0 %v426_v26 }
  0x6c   : > { %614 = vmatpush.msrb.mxu2 %v421_v27  ;;  %593 = vmatpush.msrb.mxu1 %v427_v28  ;;  %v371_v12 = vsel %vm367_vm5, %v369_v4, %v822_v5 }
  0x6d   : > { %574 = vmatpush.msrb.mxu0 %v419_v29 }
  0x6e   : > { %615 = vmatpush.msrb.mxu2 %v414_v30  ;;  %594 = vmatpush.msrb.mxu1 %v420_v31 }
  0x6f   : > { %575 = vmatpush.msrb.mxu0 %v412_v32 }
  0x70   : > { %616 = vmatpush.msrb.mxu2 %v407_v33  ;;  %595 = vmatpush.msrb.mxu1 %v413_v34 }
  0x71   : > { %576 = vmatpush.msrb.mxu0 %v405_v35 }
  0x72   : > { %617 = vmatpush.msrb.mxu2 %v400_v36  ;;  %596 = vmatpush.msrb.mxu1 %v406_v37 }
  0x73   : > { %577 = vmatpush.msrb.mxu0 %v398_v39 }
  0x74   : > { %618 = vmatpush.msrb.mxu2 %v393_v38  ;;  %597 = vmatpush.msrb.mxu1 %v399_v40 }
  0x75   : > { %578 = vmatpush.msrb.mxu0 %v391_v42 }
  0x76   : > { %619 = vmatpush.msrb.mxu2 %v386_v41  ;;  %598 = vmatpush.msrb.mxu1 %v392_v43 }
  0x77   : > { %579 = vmatpush.msrb.mxu0 %v384_v45 }
  0x78   : > { %620 = vmatpush.msrb.mxu2 %v379_v44  ;;  %599 = vmatpush.msrb.mxu1 %v385_v46 }
  0x79   : > { %621 = vmatmul.f32.vlgmr.msrb.gmra.mxu2 %v1310_v20  ;;  %580 = vmatpush.msrb.mxu0 %v377_v47 }
  0x7a   : > { %600 = vmatpush.msrb.mxu1 %v378_v48  ;;  %581 = vmatmul.f32.vlgmr.msrb.gmra.mxu0 %v1310_v20 }
  0x7b   : > { %601 = vmatmul.f32.vlgmr.msrb.gmra.mxu1 %v1310_v20 }
  0xdf   : > { %v522_v56 = vpop.f32.mrf.mxu1 }
  0xe0   : > { %v632_v61 = vrot.slane %v522_v56, 7 }
  0xe1   : > { %v502_v55 = vpop.f32.mrf.mxu0 }
  0xe2   : > { %v639_v7 = vsel %vm638_vm2, %v502_v55, %v632_v61 }
  0xe3   : > { %v562_v59 = vpop.f32.mrf.mxu3 }
  0xe4   : > { %v634_v63 = vrot.slane %v562_v59, 5 }
  0xea   : > { %v542_v58 = vpop.f32.mrf.mxu2 }
  0xeb   : > { %v633_v62 = vrot.slane %v542_v58, 6 }
  0xed   : > { %v641_v6 = vsel %vm640_vm1, %v633_v62, %v634_v63 }
  0xee   : > { %v643_v13 = vsel %vm642_vm4, %v639_v7, %v641_v6 }
  0xf7   : > { %v582_v0 = vpop.f32.mrf.mxu0 }
  0xf8   : > { %v635_v1 = vrot.slane %v582_v0, 4  ;;  %v602_v2 = vpop.f32.mrf.mxu1 }
  0xf9   : > { %v636_v3 = vrot.slane %v602_v2, 3 }
  0xfb   : > { %v645_v8 = vsel %vm644_vm3, %v635_v1, %v636_v3 }
  0xfc   : > { %v622_v9 = vpop.f32.mrf.mxu2 }
  0xfd   : > { %v637_v11 = vrot.slane %v622_v9, 2 }
  0xff   : > { %v647_v14 = vsel %vm646_vm6, %v645_v8, %v637_v11 }
 0x100   : > { %v649_v15 = vsel %vm648_vm7, %v643_v13, %v647_v14 }
 0x101   : > { %v651_v16 = vmul.f32 %v649_v15, %v371_v12 }
 0x103   : > { %656 = vst.msk [vmem:[%s352_s12] sm:$0x7f] %vm654_vm8, %v651_v16 }
 0x104   : > { %1068 = shalt.err (!%p1065_p3)
}
 0x105   : > { %843 = dma.vmem_to_hbm [thread:$0]  (%p1246_p7), %s673_s13, 112, %s675_s14, %s658_s15  }
 0x106 PF: > { %s686_s29 = sand.u32 1, %s1115_s18   ;;  %p860_p5 = pnand %p818_p9, %p1216_p6 }
 0x107   : > { %s687_s20 = scalar_lea.sflag [#allocation4], %s686_s29 }
 0x108   : > { %p861_p10 = pneg %p860_p5 }
 0x10a   : > { %1110 = dma.done.wait (%p861_p10), %s687_s20, 112  }
 0x10b   : > { %1112 = vsyncadd (%p861_p10), %s687_s20, 4294967184  ;;  %s25_s23 = sadd.s32 1, %s1135_s23   ;;  %s1384_s22 = sld [smem:[#allocation16_spill]] }
 0x10c   : > { %p22_p11 = scmp.ge.s32.totalorder %s25_s23, 4   ;;  %s1385_s20 = sld [smem:[#allocation19_spill]] }
 0x10d   : > { %s1386_s21 = sld [smem:[#allocation17_spill]]  ;;  %s1388_s18 = smov %s1119_s19 }
 0x10e   : > { %s1387_s25 = sld [smem:[#allocation18_spill]] }
 0x110   :  { %24 = sbr.rel (!%p22_p11) target bundleno = 12 (0xc), region = 109 }
 0x111   : > { %s1389_s19 = smov %s1384_s22 }
 0x114   : > { %s1390_s22 = smov %s1387_s25 }
 0x115   :  { %693 = vsyncpa [#allocation3], 1 }
 0x116   :  { %695 = vsyncpa [#allocation3 + $0x1], 1 }
 0x117   :  { %696 = vsyncpa [#allocation6], 1 }
 0x118   :  { %698 = vsyncpa [#allocation6 + $0x1], 1 }
 0x119   :  { %699 = vsyncpa [#allocation9], 1 }
 0x11a   :  { %700 = vsyncpa [#allocation4], 1 }
 0x11b   :  { %702 = vsyncpa [#allocation4 + $0x1], 1 }

</bundles_post_ra>
